<compile_context>
chip_gen: v7x
topology: tpu7x:2x2x1
jax: 0.10.0
libtpu: 0.0.40
codegen_flags: <defaults>
</compile_context>

<pallas_src>
import functools

import jax
import jax.numpy as jnp
from jax.experimental import pallas as pl
from jax.experimental.pallas import tpu as pltpu

K = 3  # kernel size fixed by the module defaults (kernel_size=3, stride=1, padding=1)


def up_conv_kernel(x_ref, w1_ref, b1_ref, w2_ref, b2_ref, o_ref, *, img_rows):
    # x_ref : (M, W*Cin)         M = Nb*H rows; (w, ci) packed on the lane axis
    # w1_ref: (3*W*Cin,  W*Cout) stage-1 banded weights, kh-major
    # b1_ref: (1, W*Cout)        stage-1 bias tiled across w
    # w2_ref: (3*W*Cout, W*Cout) stage-2 banded weights, kh-major
    # b2_ref: (1, W*Cout)        stage-2 bias tiled across w
    # o_ref : (M, W*Cout)        (w, co) packed on the lane axis (full 128-lane stores)
    M = x_ref.shape[0]
    H = img_rows
    n_img = M // H

    # Rows where the vertical roll wrapped across an image boundary must be zeroed --
    # that IS the conv's vertical zero padding.  Built from iota + compares only
    # (no vector integer mod), unrolled over the small static number of images per block.
    row = jax.lax.broadcasted_iota(jnp.int32, (M, 1), 0)
    is_first = row == 0
    is_last = row == H - 1
    for j in range(1, n_img):
        is_first = jnp.logical_or(is_first, row == j * H)
        is_last = jnp.logical_or(is_last, row == j * H + H - 1)

    def kh_expand(v):
        # (M, L) -> (M, 3L): [v[h-1], v[h], v[h+1]] per row, with per-image zero halo.
        up = jnp.where(is_first, 0.0, pltpu.roll(v, shift=1, axis=0))      # v[h-1]
        dn = jnp.where(is_last, 0.0, pltpu.roll(v, shift=M - 1, axis=0))   # v[h+1]
        return jnp.concatenate([up, v, dn], axis=1)

    x = x_ref[...].astype(jnp.float32)

    # Stage 1: single lane-dense MXU matmul (contraction K = 3*W*Cin) + bias + ReLU.
    a1 = jnp.dot(kh_expand(x), w1_ref[...], preferred_element_type=jnp.float32)
    a1 = jnp.maximum(a1 + b1_ref[...], 0.0)          # stage-1 activation stays in vregs

    # Stage 2: single MXU matmul (contraction K = 3*W*Cout) + bias + ReLU.
    a2 = jnp.dot(kh_expand(a1), w2_ref[...], preferred_element_type=jnp.float32)
    a2 = jnp.maximum(a2 + b2_ref[...], 0.0)

    o_ref[...] = a2.astype(o_ref.dtype)


def _conv_equiv_weight(wt):
    """ConvTranspose2d weight (Cin, Cout, 3, 3) -> equivalent 'same' conv weight (3, 3, Cin, Cout)."""
    return jnp.transpose(wt, (2, 3, 0, 1))[::-1, ::-1]


def _band_weights(w_eff, W):
    """Fold kh/kw taps + horizontal zero padding into one (3*W*Cin, W*Cout) matrix.

    With x3[h] = concat([x[h-1], x[h], x[h+1]]) (lane-packed rows, zero halo rows),
    the whole 3x3 'same' conv is   y[h] = x3[h] @ band .
    """
    Cin, Cout = w_eff.shape[2], w_eff.shape[3]
    bands = []
    for kh in range(K):
        B = jnp.zeros((W * Cin, W * Cout), w_eff.dtype)
        for kw in range(K):
            # S[w_src, w_dst] = 1  iff  w_src == w_dst + (kw - 1); out-of-range -> 0 (the pad)
            S = jnp.eye(W, k=-(kw - 1), dtype=w_eff.dtype)
            B = B + jnp.kron(S, w_eff[kh, kw])
        bands.append(B)
    return jnp.concatenate(bands, axis=0)   # kh-major, matches kh_expand's concat order


def prepare_up_conv_params(params, W):
    """Hoisted per-parameter-set precompute (banded weights + lane-tiled biases).

    Call once per parameter set -- the banding is O((W*C)^2) work that must not recur
    per forward call.  Result feeds up_conv_forward for any number of batches.
    """
    Cout = params["w1"].shape[1]
    # TODO(synk): bf16 banded weights / activations for the v6e/v7x MXU; kept f32 so the
    # 1e-4 reference tolerance holds at these contraction sizes.
    return {
        "w1b": _band_weights(_conv_equiv_weight(params["w1"]), W).astype(jnp.float32),
        "b1t": jnp.tile(params["b1"], W).reshape(1, W * Cout).astype(jnp.float32),
        "w2b": _band_weights(_conv_equiv_weight(params["w2"]), W).astype(jnp.float32),
        "b2t": jnp.tile(params["b2"], W).reshape(1, W * Cout).astype(jnp.float32),
    }


def _pick_batch_fold(N, H):
    """Images folded per grid step: prefer >=128 rows (fills the 128/256-row MXU) while
    keeping >=2 grid steps when possible (two v7x TensorCores); cap at 256 rows to bound
    accumulator vreg pressure and double-buffered VMEM (64 MiB on v7x)."""
    best = 1
    for nb in range(1, N + 1):
        if N % nb == 0 and nb * H <= 256:
            best = nb
            if nb * H >= 128 and N // nb >= 2:
                break
    return best


def up_conv_forward(x_nchw, kparams):
    """Forward pass of the `up_conv` module. x_nchw: (N, Cin, H, W) -> (N, Cout, H, W)."""
    N, Cin, H, W = x_nchw.shape
    WCi = W * Cin
    WCo = kparams["w2b"].shape[1]
    Cout = WCo // W

    # NCHW -> (N*H, W*Cin): channels ride the lane axis with W (lane-dense); batch and H
    # fold into the matmul M dimension.  This transpose is a tiny pass XLA fuses/keeps
    # off the critical path at these sizes (see TODO at top for the fully in-kernel repack).
    x = jnp.transpose(x_nchw, (0, 2, 3, 1)).reshape(N * H, WCi)

    nb = _pick_batch_fold(N, H)
    mb = nb * H
    grid = (N // nb,)

    def const_spec(shape):
        # Grid-invariant weights/biases.  (Once these grow large, add
        # pipeline_mode=pl.Buffered(1) to skip their double-buffering.)
        return pl.BlockSpec(shape, lambda g: (0, 0))

    out = pl.pallas_call(
        functools.partial(up_conv_kernel, img_rows=H),
        out_shape=jax.ShapeDtypeStruct((N * H, WCo), x_nchw.dtype),
        grid=grid,
        in_specs=[
            pl.BlockSpec((mb, WCi), lambda g: (g, 0)),
            const_spec((K * WCi, WCo)),
            const_spec((1, WCo)),
            const_spec((K * WCo, WCo)),
            const_spec((1, WCo)),
        ],
        out_specs=pl.BlockSpec((mb, WCo), lambda g: (g, 0)),
        compiler_params=pltpu.CompilerParams(dimension_semantics=("parallel",)),
    )(x, kparams["w1b"], kparams["b1t"], kparams["w2b"], kparams["b2t"])

    # (N*H, W*Cout) -> NCHW
    return jnp.transpose(out.reshape(N, H, W, Cout), (0, 3, 1, 2))


def init_params(key, in_channels, out_channels):
    """Deterministic synthetic init (PyTorch-style uniform fan bounds)."""
    k1, k2, k3, k4 = jax.random.split(key, 4)
    bound1 = 1.0 / (in_channels * K * K) ** 0.5
    bound2 = 1.0 / (out_channels * K * K) ** 0.5
    return {
        # ConvTranspose2d weight layout: (in_channels, out_channels, kH, kW)
        "w1": jax.random.uniform(k1, (in_channels, out_channels, K, K),
                                 jnp.float32, -bound1, bound1),
        "b1": jax.random.uniform(k2, (out_channels,), jnp.float32, -bound1, bound1),
        "w2": jax.random.uniform(k3, (out_channels, out_channels, K, K),
                                 jnp.float32, -bound2, bound2),
        "b2": jax.random.uniform(k4, (out_channels,), jnp.float32, -bound2, bound2),
    }


def _ref_stage(x_nhwc, wt, b):
    """Pure-JAX reference for one ConvTranspose2d(k=3,s=1,p=1)+ReLU stage."""
    w_eff = _conv_equiv_weight(wt)
    y = jax.lax.conv_general_dilated(
        x_nhwc, w_eff, window_strides=(1, 1), padding="SAME",
        dimension_numbers=("NHWC", "HWIO", "NHWC"))
    return jnp.maximum(y + b, 0.0)


def _ref_forward(x_nchw, params):
    x = jnp.transpose(x_nchw, (0, 2, 3, 1))
    x = _ref_stage(x, params["w1"], params["b1"])
    x = _ref_stage(x, params["w2"], params["b2"])
    return jnp.transpose(x, (0, 3, 1, 2))


if __name__ == "__main__":
    key = jax.random.PRNGKey(0)
    k_x, k_p = jax.random.split(key)

    N, Cin, Cout, H, W = 2, 4, 8, 16, 16
    x = jax.random.normal(k_x, (N, Cin, H, W), jnp.float32)
    params = init_params(k_p, Cin, Cout)

    kparams = prepare_up_conv_params(params, W)   # hoisted: once per parameter set
    fwd = jax.jit(up_conv_forward)

    out = jax.block_until_ready(fwd(x, kparams))

    ref = _ref_forward(x, params)
    assert out.shape == (N, Cout, H, W)
    assert jnp.allclose(out, ref, atol=1e-4, rtol=1e-4)

    print("KERNEL_OK")
</pallas_src>

<mosaic_0001>
module attributes {stable_mosaic.version = 11 : i64} {
  func.func @up_conv_kernel(%arg0: i32, %arg1: memref<32x64xf32, #tpu.memory_space<vmem>>, %arg2: memref<192x128xf32, #tpu.memory_space<vmem>>, %arg3: memref<1x128xf32, #tpu.memory_space<vmem>>, %arg4: memref<384x128xf32, #tpu.memory_space<vmem>>, %arg5: memref<1x128xf32, #tpu.memory_space<vmem>>, %arg6: memref<32x128xf32, #tpu.memory_space<vmem>>) attributes {dimension_semantics = [#tpu.dimension_semantics<parallel>], iteration_bounds = array<i64: 1>, scalar_prefetch = 0 : i64, scratch_operands = 0 : i64, tpu.core_type = #tpu.core_type<tc>, window_params = [{transform_indices = @transform_0, window_bounds = array<i64: 32, 64>}, {pipeline_mode = #tpu.pipeline_mode<synchronous>, transform_indices = @transform_1, window_bounds = array<i64: 192, 128>}, {pipeline_mode = #tpu.pipeline_mode<synchronous>, transform_indices = @transform_2, window_bounds = array<i64: 1, 128>}, {pipeline_mode = #tpu.pipeline_mode<synchronous>, transform_indices = @transform_3, window_bounds = array<i64: 384, 128>}, {pipeline_mode = #tpu.pipeline_mode<synchronous>, transform_indices = @transform_4, window_bounds = array<i64: 1, 128>}, {transform_indices = @transform_5, window_bounds = array<i64: 32, 128>}]} {
    %0 = tpu.iota {dimensions = array<i32: 0>} : vector<32x1xi32>
    %c0_i32 = arith.constant 0 : i32
    %1 = vector.broadcast %c0_i32 : i32 to vector<32x1xi32>
    %2 = arith.cmpi eq, %0, %1 : vector<32x1xi32>
    %c15_i32 = arith.constant 15 : i32
    %3 = vector.broadcast %c15_i32 : i32 to vector<32x1xi32>
    %4 = arith.cmpi eq, %0, %3 : vector<32x1xi32>
    %c16_i32 = arith.constant 16 : i32
    %5 = vector.broadcast %c16_i32 : i32 to vector<32x1xi32>
    %6 = arith.cmpi eq, %0, %5 : vector<32x1xi32>
    %7 = arith.ori %2, %6 : vector<32x1xi1>
    %c31_i32 = arith.constant 31 : i32
    %8 = vector.broadcast %c31_i32 : i32 to vector<32x1xi32>
    %9 = arith.cmpi eq, %0, %8 : vector<32x1xi32>
    %10 = arith.ori %4, %9 : vector<32x1xi1>
    %c0 = arith.constant 0 : index
    %c0_0 = arith.constant 0 : index
    %11 = vector.load %arg1[%c0, %c0_0] : memref<32x64xf32, #tpu.memory_space<vmem>>, vector<32x64xf32>
    %c1_i32 = arith.constant 1 : i32
    %12 = tpu.dynamic_rotate %11 by %c1_i32 dim 0 : vector<32x64xf32>, i32 -> vector<32x64xf32>
    %cst = arith.constant 0.000000e+00 : f32
    %13 = vector.shape_cast %7 : vector<32x1xi1> to vector<32x1xi1>
    %14 = vector.broadcast %13 : vector<32x1xi1> to vector<32x64xi1>
    %15 = vector.broadcast %cst : f32 to vector<32x64xf32>
    %16 = arith.select %14, %15, %12 : vector<32x64xi1>, vector<32x64xf32>
    %c31_i32_1 = arith.constant 31 : i32
    %17 = tpu.dynamic_rotate %11 by %c31_i32_1 dim 0 : vector<32x64xf32>, i32 -> vector<32x64xf32>
    %cst_2 = arith.constant 0.000000e+00 : f32
    %18 = vector.shape_cast %10 : vector<32x1xi1> to vector<32x1xi1>
    %19 = vector.broadcast %18 : vector<32x1xi1> to vector<32x64xi1>
    %20 = vector.broadcast %cst_2 : f32 to vector<32x64xf32>
    %21 = arith.select %19, %20, %17 : vector<32x64xi1>, vector<32x64xf32>
    %22 = tpu.concatenate %16, %11, %21 in 1 : vector<32x64xf32>, vector<32x64xf32>, vector<32x64xf32> -> vector<32x192xf32>
    %c0_3 = arith.constant 0 : index
    %c0_4 = arith.constant 0 : index
    %23 = vector.load %arg2[%c0_3, %c0_4] : memref<192x128xf32, #tpu.memory_space<vmem>>, vector<192x128xf32>
    %cst_5 = arith.constant dense<0.000000e+00> : vector<32x128xf32>
    %24 = tpu.matmul %22, %23, %cst_5 {dimension_numbers = #tpu.dot_dimension_numbers<[1], [0], [0], [1], [0, 0, 1, 1], [], []>} : vector<32x192xf32>, vector<192x128xf32>, vector<32x128xf32> -> vector<32x128xf32>
    %c0_6 = arith.constant 0 : index
    %c0_7 = arith.constant 0 : index
    %25 = vector.load %arg3[%c0_6, %c0_7] : memref<1x128xf32, #tpu.memory_space<vmem>>, vector<1x128xf32>
    %26 = vector.broadcast %25 : vector<1x128xf32> to vector<32x128xf32>
    %27 = arith.addf %24, %26 : vector<32x128xf32>
    %cst_8 = arith.constant 0.000000e+00 : f32
    %28 = vector.broadcast %cst_8 : f32 to vector<32x128xf32>
    %29 = arith.maximumf %27, %28 : vector<32x128xf32>
    %c1_i32_9 = arith.constant 1 : i32
    %30 = tpu.dynamic_rotate %29 by %c1_i32_9 dim 0 : vector<32x128xf32>, i32 -> vector<32x128xf32>
    %cst_10 = arith.constant 0.000000e+00 : f32
    %31 = vector.shape_cast %7 : vector<32x1xi1> to vector<32x1xi1>
    %32 = vector.broadcast %31 : vector<32x1xi1> to vector<32x128xi1>
    %33 = vector.broadcast %cst_10 : f32 to vector<32x128xf32>
    %34 = arith.select %32, %33, %30 : vector<32x128xi1>, vector<32x128xf32>
    %c31_i32_11 = arith.constant 31 : i32
    %35 = tpu.dynamic_rotate %29 by %c31_i32_11 dim 0 : vector<32x128xf32>, i32 -> vector<32x128xf32>
    %cst_12 = arith.constant 0.000000e+00 : f32
    %36 = vector.shape_cast %10 : vector<32x1xi1> to vector<32x1xi1>
    %37 = vector.broadcast %36 : vector<32x1xi1> to vector<32x128xi1>
    %38 = vector.broadcast %cst_12 : f32 to vector<32x128xf32>
    %39 = arith.select %37, %38, %35 : vector<32x128xi1>, vector<32x128xf32>
    %40 = tpu.concatenate %34, %29, %39 in 1 : vector<32x128xf32>, vector<32x128xf32>, vector<32x128xf32> -> vector<32x384xf32>
    %c0_13 = arith.constant 0 : index
    %c0_14 = arith.constant 0 : index
    %41 = vector.load %arg4[%c0_13, %c0_14] : memref<384x128xf32, #tpu.memory_space<vmem>>, vector<384x128xf32>
    %cst_15 = arith.constant dense<0.000000e+00> : vector<32x128xf32>
    %42 = tpu.matmul %40, %41, %cst_15 {dimension_numbers = #tpu.dot_dimension_numbers<[1], [0], [0], [1], [0, 0, 1, 1], [], []>} : vector<32x384xf32>, vector<384x128xf32>, vector<32x128xf32> -> vector<32x128xf32>
    %c0_16 = arith.constant 0 : index
    %c0_17 = arith.constant 0 : index
    %43 = vector.load %arg5[%c0_16, %c0_17] : memref<1x128xf32, #tpu.memory_space<vmem>>, vector<1x128xf32>
    %44 = vector.broadcast %43 : vector<1x128xf32> to vector<32x128xf32>
    %45 = arith.addf %42, %44 : vector<32x128xf32>
    %cst_18 = arith.constant 0.000000e+00 : f32
    %46 = vector.broadcast %cst_18 : f32 to vector<32x128xf32>
    %47 = arith.maximumf %45, %46 : vector<32x128xf32>
    %c0_19 = arith.constant 0 : index
    %c0_20 = arith.constant 0 : index
    %48 = vector.load %arg6[%c0_19, %c0_20] : memref<32x128xf32, #tpu.memory_space<vmem>>, vector<32x128xf32>
    tpu.vector_store %arg6[%c0_19, %c0_20], %47 {strides = array<i32>} : memref<32x128xf32, #tpu.memory_space<vmem>>, vector<32x128xf32>,
    return
  }
  func.func @transform_0(%arg0: i32) -> (i32, i32) {
    %c0_i32 = arith.constant 0 : i32
    %c0_i32_0 = arith.constant 0 : i32
    return %arg0, %c0_i32 : i32, i32
  }
  func.func @transform_1(%arg0: i32) -> (i32, i32) {
    %c0_i32 = arith.constant 0 : i32
    %c0_i32_0 = arith.constant 0 : i32
    %c0_i32_1 = arith.constant 0 : i32
    return %c0_i32, %c0_i32_0 : i32, i32
  }
  func.func @transform_2(%arg0: i32) -> (i32, i32) {
    %c0_i32 = arith.constant 0 : i32
    %c0_i32_0 = arith.constant 0 : i32
    %c0_i32_1 = arith.constant 0 : i32
    return %c0_i32, %c0_i32_0 : i32, i32
  }
  func.func @transform_3(%arg0: i32) -> (i32, i32) {
    %c0_i32 = arith.constant 0 : i32
    %c0_i32_0 = arith.constant 0 : i32
    %c0_i32_1 = arith.constant 0 : i32
    return %c0_i32, %c0_i32_0 : i32, i32
  }
  func.func @transform_4(%arg0: i32) -> (i32, i32) {
    %c0_i32 = arith.constant 0 : i32
    %c0_i32_0 = arith.constant 0 : i32
    %c0_i32_1 = arith.constant 0 : i32
    return %c0_i32, %c0_i32_0 : i32, i32
  }
  func.func @transform_5(%arg0: i32) -> (i32, i32) {
    %c0_i32 = arith.constant 0 : i32
    %c0_i32_0 = arith.constant 0 : i32
    return %arg0, %c0_i32 : i32, i32
  }
}

</mosaic_0001>

<bundles_post_ra>
// kernel: up_conv_forward.1
= control target key start
LH: loop header
LB: loop body
LE: loop exit
PB: predicated region body
PF: predicated region fallthrough
CT: control target
= control target key end

     0   :  { %10 = vsyncpa [#allocation3], 0  ;;  %s769_s18 = smov [#allocation2]   ;;  %s1096_s0 = inlined_call_operand.vmem [shape: f32[32,64], index: 0, kind: input, shape index: {}]   ;;  %s1097_s1 = inlined_call_operand.hbm [shape: f32[192,128], index: 1, kind: input, shape index: {}]   ;;  %s1098_s2 = inlined_call_operand.vmem [shape: f32[1,128], index: 2, kind: input, shape index: {}]   ;;  %s1099_s3 = inlined_call_operand.vmem [shape: f32[384,128], index: 3, kind: input, shape index: {}]   ;;  %s1100_s4 = inlined_call_operand.vmem [shape: f32[1,128], index: 4, kind: input, shape index: {}]   ;;  %s1101_s5 = inlined_call_operand.vmem [shape: f32[32,128], index: 5, kind: output, shape index: {}]  }
   0x1   :  { %s18_s19 = sshll.u32 %s769_s18, 4  ;;  %s745_s22 = scalar_lea.hbm %s1097_s1, 3072  ;;  %s19_s19 = int_to_ptr.vmem [resolvable:$true] %s18_s19 }
   0x2   :  { %p746_p0 = scmp.ne.s32.totalorder %s1097_s1, %s745_s22  ;;  %p749_p1 = scmp.lt.u32.totalorder %s745_s22, %s1097_s1 }
   0x4   :  { %p751_p2 = pnand %p749_p1, %p746_p0 }
   0x6   :  { %754 = shalt.err (!%p751_p2)
}
   0x7   :  { %s755_s27 = scalar_lea.vmem %s19_s19, 3072  ;;  %p760_p4 = scmp.lt.s32.totalorder %s19_s19, %s19_s19 }
   0x8   :  { %p756_p3 = scmp.ne.s32.totalorder %s19_s19, %s755_s27  ;;  %p761_p5 = scmp.lt.s32.totalorder %s755_s27, %s755_s27 }
   0xa   :  { %p762_p6 = por %p761_p5, %p760_p4 }
   0xc   :  { %p763_p7 = pnand %p762_p6, %p756_p3 }
   0xe   :  { %766 = shalt.err (!%p763_p7)
}
   0xf   :  { %s770_s28 = smov 128   ;;  %s771_s29 = smov 8  }
  0x10   :  { %24 = dma.hbm_to_vmem [thread:$0]  %s1097_s1, 3072, %s19_s19, [#allocation3], %s770_s28, %s770_s28, %s771_s29  }
  0x11   :  { %767 = dma.done.wait [#allocation3], 3072  }
  0x12   :  { %768 = vsyncadd [#allocation3], 4294964224  ;;  %v34_v0 = vlaneseq  ;;  %v772_v1 = vmov 0.0|0.0   ;;  %vm125_vm0 = vcmask 523264   ;;  %v63_v4 = vld [vmem:[%s1096_s0] sm:$0xff]  ;;  %v64_v5 = vld [vmem:[%s1096_s0 + $0x8] sm:$0xff] }
  0x13   :  { %640 = vmatprep.subr.bf16.mxu0 %v772_v1  ;;  %v65_v6 = vld [vmem:[%s1096_s0 + $0x10] sm:$0xff]  ;;  %s773_s12 = smov 64   ;;  %v67_v7 = vrot.slane %v63_v4, 7  ;;  %v88_v8 = vrot.slane %v63_v4, 1  ;;  %v68_v9 = vrot.slane %v64_v5, 7  ;;  %v89_v10 = vrot.slane %v64_v5, 1 }
  0x14   :  { %v817_v2 = vshrl.u32 %v34_v0, 7  ;;  %113 = vrot.lane.b32.xlu0 %v63_v4, %s773_s12  ;;  %117 = vrot.lane.b32.xlu1 %v65_v6, %s773_s12  ;;  %v66_v11 = vld [vmem:[%s1096_s0 + $0x18] sm:$0xff]  ;;  %v130_v12 = vld [vmem:[#allocation2] sm:$0xff]  ;;  %v69_v13 = vrot.slane %v65_v6, 7  ;;  %v90_v14 = vrot.slane %v65_v6, 1  ;;  %v131_v17 = vld [vmem:[#allocation2 + $0x8] sm:$0xff] }
  0x15   :  { %v70_v15 = vrot.slane %v66_v11, 7  ;;  %v91_v16 = vrot.slane %v66_v11, 1  ;;  %v641_v18 = vpack.c.bf16 %v131_v17, %v130_v12  ;;  %v132_v19 = vld [vmem:[#allocation2 + $0x10] sm:$0xff]  ;;  %v133_v20 = vld [vmem:[#allocation2 + $0x18] sm:$0xff]  ;;  %v134_v30 = vld [vmem:[#allocation2 + $0x20] sm:$0xff] }
  0x16   :  { %v820_v3 = vadd.s32 8, %v817_v2  ;;  %vm92_vm1 = vcmp.lt.s32.totalorder %v817_v2, 7  ;;  %vm71_vm2 = vcmp.lt.s32.totalorder %v817_v2, 1  ;;  %v644_v27 = vpack.c.bf16 %v133_v20, %v132_v19  ;;  %v135_v31 = vld [vmem:[#allocation2 + $0x28] sm:$0xff]  ;;  %v136_v33 = vld [vmem:[#allocation2 + $0x30] sm:$0xff]  ;;  %v137_v34 = vld [vmem:[#allocation2 + $0x38] sm:$0xff] }
  0x17   :  { %v95_v21 = vsel %vm92_vm1, %v88_v8, %v89_v10  ;;  %v841_v22 = vsel %vm71_vm2, %v67_v7, %v68_v9  ;;  %v846_v23 = vsel %vm71_vm2, %v70_v15, %v67_v7  ;;  %v94_v24 = vsel %vm92_vm1, %v89_v10, %v90_v14  ;;  %642 = vmatpush1.bf16.msra.mxu0 %v641_v18  ;;  %v302_v36 = vld [vmem:[%s1099_s3 + $0x80] sm:$0xff]  ;;  %v303_v37 = vld [vmem:[%s1099_s3 + $0x88] sm:$0xff]  ;;  %v304_v41 = vld [vmem:[%s1099_s3 + $0x90] sm:$0xff] }
  0x18   :  { %vm44_vm3 = vcmp.eq.s32.totalorder %v820_v3, 15  ;;  %525 = vmatprep.mubr.msk.f32.mxu0 %vm125_vm0, %v95_v21  ;;  %115 = vrot.lane.b32.xlu0 %v64_v5, %s773_s12  ;;  %v856_v26 = vsel %vm92_vm1, %v90_v14, %v91_v16  ;;  %v860_v28 = vsel %vm71_vm2, %v68_v9, %v69_v13  ;;  %v864_v29 = vsel %vm92_vm1, %v91_v16, %v88_v8  ;;  %v286_v38 = vld [vmem:[%s1099_s3] sm:$0xff]  ;;  %v287_v40 = vld [vmem:[%s1099_s3 + $0x8] sm:$0xff]  ;;  %v305_v42 = vld [vmem:[%s1099_s3 + $0x98] sm:$0xff] }
  0x19   :  { %119 = vrot.lane.b32.xlu1 %v66_v11, %s773_s12  ;;  %v852_v25 = vsel %vm44_vm3, 0.0, %v94_v24  ;;  %643 = vmatprep.subr.bf16.mxu0 %v772_v1  ;;  %v869_v32 = vsel %vm71_vm2, %v69_v13, %v70_v15  ;;  %v647_v35 = vpack.c.bf16 %v135_v31, %v134_v30  ;;  %v676_v39 = vpack.c.bf16 %v303_v37, %v302_v36  ;;  %v288_v45 = vld [vmem:[%s1099_s3 + $0x10] sm:$0xff]  ;;  %v289_v46 = vld [vmem:[%s1099_s3 + $0x18] sm:$0xff]  ;;  %v306_v47 = vld [vmem:[%s1099_s3 + $0xa0] sm:$0xff] }
  0x1a   :  { %v678_v43 = vpack.c.bf16 %v287_v40, %v286_v38  ;;  %v680_v44 = vpack.c.bf16 %v305_v42, %v304_v41  ;;  %v307_v48 = vld [vmem:[%s1099_s3 + $0xa8] sm:$0xff]  ;;  %v650_v49 = vpack.c.bf16 %v137_v34, %v136_v33  ;;  %v138_v50 = vld [vmem:[#allocation2 + $0x40] sm:$0xff]  ;;  %v682_v51 = vpack.c.bf16 %v289_v46, %v288_v45  ;;  %v308_v56 = vld [vmem:[%s1099_s3 + $0xb0] sm:$0xff] }
  0x1b   :  { %645 = vmatpush1.bf16.msra.mxu0 %v644_v27  ;;  %677 = vmatprep.subr.bf16.mxu1 %v676_v39  ;;  %v139_v52 = vld [vmem:[#allocation2 + $0x48] sm:$0xff]  ;;  %v684_v53 = vpack.c.bf16 %v307_v48, %v306_v47  ;;  %v290_v54 = vld [vmem:[%s1099_s3 + $0x20] sm:$0xff]  ;;  %v309_v57 = vld [vmem:[%s1099_s3 + $0xb8] sm:$0xff]  ;;  %vm39_vm4 = vcmp.eq.s32.totalorder %v817_v2, 0  ;;  %v925_v21 = vadd.s32 16, %v817_v2  ;;  %v933_v31 = vadd.s32 24, %v817_v2 }
  0x1c   :  { %646 = vmatprep.subr.bf16.mxu0 %v772_v1  ;;  %679 = vmatpush3.bf16.msra.mxu1 %v678_v43  ;;  %v291_v55 = vld [vmem:[%s1099_s3 + $0x28] sm:$0xff]  ;;  %v653_v58 = vpack.c.bf16 %v139_v52, %v138_v50  ;;  %v140_v60 = vld [vmem:[#allocation2 + $0x50] sm:$0xff]  ;;  %v141_v61 = vld [vmem:[#allocation2 + $0x58] sm:$0xff]  ;;  %v688_v62 = vpack.c.bf16 %v309_v57, %v308_v56  ;;  %v84_v24 = vsel %vm39_vm4, 0.0, %v846_v23 }
  0x1d   :  { %681 = vmatprep.subr.bf16.mxu1 %v680_v44  ;;  %v686_v59 = vpack.c.bf16 %v291_v55, %v290_v54  ;;  %v656_v63 = vpack.c.bf16 %v141_v61, %v140_v60  ;;  %v142_v0 = vld [vmem:[#allocation2 + $0x60] sm:$0xff]  ;;  %v143_v4 = vld [vmem:[#allocation2 + $0x68] sm:$0xff]  ;;  %v144_v6 = vld [vmem:[#allocation2 + $0x70] sm:$0xff]  ;;  %vm49_vm5 = vcmp.eq.s32.totalorder %v925_v21, 16  ;;  %vm58_vm6 = vcmp.eq.s32.totalorder %v933_v31, 31 }
  0x1e   :  { %v659_v5 = vpack.c.bf16 %v143_v4, %v142_v0  ;;  %v145_v7 = vld [vmem:[#allocation2 + $0x78] sm:$0xff]  ;;  %v146_v9 = vld [vmem:[#allocation2 + $0x80] sm:$0xff]  ;;  %v147_v10 = vld [vmem:[#allocation2 + $0x88] sm:$0xff]  ;;  %v86_v34 = vsel %vm49_vm5, 0.0, %v860_v28 }
  0x1f   :  { %648 = vmatpush1.bf16.msra.mxu0 %v647_v35  ;;  %v662_v8 = vpack.c.bf16 %v145_v7, %v144_v6  ;;  %v665_v11 = vpack.c.bf16 %v147_v10, %v146_v9  ;;  %v148_v12 = vld [vmem:[#allocation2 + $0x90] sm:$0xff]  ;;  %v149_v13 = vld [vmem:[#allocation2 + $0x98] sm:$0xff]  ;;  %v150_v15 = vld [vmem:[#allocation2 + $0xa0] sm:$0xff] }
  0x20   :  { %649 = vmatprep.subr.bf16.mxu0 %v772_v1  ;;  %683 = vmatpush3.bf16.msra.mxu1 %v682_v51  ;;  %v668_v14 = vpack.c.bf16 %v149_v13, %v148_v12  ;;  %v151_v16 = vld [vmem:[#allocation2 + $0xa8] sm:$0xff]  ;;  %v152_v18 = vld [vmem:[#allocation2 + $0xb0] sm:$0xff]  ;;  %v153_v19 = vld [vmem:[#allocation2 + $0xb8] sm:$0xff] }
  0x21   :  { %685 = vmatprep.subr.bf16.mxu1 %v684_v53  ;;  %v671_v17 = vpack.c.bf16 %v151_v16, %v150_v15  ;;  %v674_v20 = vpack.c.bf16 %v153_v19, %v152_v18  ;;  %v311_v38 = vld [vmem:[%s1099_s3 + $0xc8] sm:$0xff]  ;;  %v294_v39 = vld [vmem:[%s1099_s3 + $0x40] sm:$0xff]  ;;  %v312_v42 = vld [vmem:[%s1099_s3 + $0xd0] sm:$0xff] }
  0x22   :  { %v295_v40 = vld [vmem:[%s1099_s3 + $0x48] sm:$0xff]  ;;  %v313_v43 = vld [vmem:[%s1099_s3 + $0xd8] sm:$0xff]  ;;  %v296_v45 = vld [vmem:[%s1099_s3 + $0x50] sm:$0xff] }
  0x23   :  { %651 = vmatpush1.bf16.msra.mxu0 %v650_v49  ;;  %v694_v41 = vpack.c.bf16 %v295_v40, %v294_v39  ;;  %v696_v44 = vpack.c.bf16 %v313_v43, %v312_v42  ;;  %v297_v46 = vld [vmem:[%s1099_s3 + $0x58] sm:$0xff]  ;;  %v314_v48 = vld [vmem:[%s1099_s3 + $0xe0] sm:$0xff]  ;;  %v315_v49 = vld [vmem:[%s1099_s3 + $0xe8] sm:$0xff] }
  0x24   :  { %652 = vmatprep.subr.bf16.mxu0 %v772_v1  ;;  %687 = vmatpush3.bf16.msra.mxu1 %v686_v59  ;;  %v698_v47 = vpack.c.bf16 %v297_v46, %v296_v45  ;;  %v700_v50 = vpack.c.bf16 %v315_v49, %v314_v48  ;;  %v298_v51 = vld [vmem:[%s1099_s3 + $0x60] sm:$0xff]  ;;  %v299_v52 = vld [vmem:[%s1099_s3 + $0x68] sm:$0xff]  ;;  %v316_v54 = vld [vmem:[%s1099_s3 + $0xf0] sm:$0xff] }
  0x25   :  { %689 = vmatprep.subr.bf16.mxu1 %v688_v62  ;;  %v702_v53 = vpack.c.bf16 %v299_v52, %v298_v51  ;;  %v317_v55 = vld [vmem:[%s1099_s3 + $0xf8] sm:$0xff]  ;;  %v300_v57 = vld [vmem:[%s1099_s3 + $0x70] sm:$0xff]  ;;  %v318_v60 = vld [vmem:[%s1099_s3 + $0x100] sm:$0xff] }
  0x26   :  { %v704_v56 = vpack.c.bf16 %v317_v55, %v316_v54  ;;  %v319_v61 = vld [vmem:[%s1099_s3 + $0x108] sm:$0xff]  ;;  %vm530_vm7 = vmneg %vm39_vm4  ;;  %v324_v42 = vld [vmem:[%s1099_s3 + $0x130] sm:$0xff] }
  0x27   :  { %654 = vmatpush1.bf16.msra.mxu0 %v653_v58  ;;  %v301_v58 = vld [vmem:[%s1099_s3 + $0x78] sm:$0xff]  ;;  %v708_v62 = vpack.c.bf16 %v319_v61, %v318_v60  ;;  %vm532_vm8 = vmneg %vm49_vm5  ;;  %v327_v45 = vld [vmem:[%s1099_s3 + $0x148] sm:$0xff] }
  0x28   :  { %655 = vmatprep.subr.bf16.mxu0 %v772_v1  ;;  %v706_v59 = vpack.c.bf16 %v301_v58, %v300_v57  ;;  %v325_v43 = vld [vmem:[%s1099_s3 + $0x138] sm:$0xff]  ;;  %v328_v21 = vld [vmem:[%s1099_s3 + $0x150] sm:$0xff]  ;;  %v330_v49 = vld [vmem:[%s1099_s3 + $0x160] sm:$0xff] }
  0x29   :  { %v720_v2 = vpack.c.bf16 %v325_v43, %v324_v42  ;;  %v332_v52 = vld [vmem:[%s1099_s3 + $0x170] sm:$0xff]  ;;  %vm534_vm9 = vmneg %vm44_vm3 }
  0x2a   :  { %vm536_vm10 = vmneg %vm58_vm6 }
  0x2b   :  { %657 = vmatpush1.bf16.msra.mxu0 %v656_v63  ;;  %v524_v63 = vld [vmem:[%s1098_s2] ss:$0 sm:$0xff] }
  0x2c   :  { %658 = vmatprep.subr.bf16.mxu0 %v772_v1 }
  0x2f   :  { %660 = vmatpush1.bf16.msra.mxu0 %v659_v5 }
  0x30   :  { %661 = vmatprep.subr.bf16.mxu0 %v772_v1 }
  0x33   :  { %663 = vmatpush1.bf16.msra.mxu0 %v662_v8 }
  0x34   :  { %664 = vmatprep.subr.bf16.mxu0 %v772_v1 }
  0x37   :  { %666 = vmatpush1.bf16.msra.mxu0 %v665_v11 }
  0x38   :  { %667 = vmatprep.subr.bf16.mxu0 %v772_v1 }
  0x3b   :  { %669 = vmatpush1.bf16.msra.mxu0 %v668_v14 }
  0x3c   :  { %670 = vmatprep.subr.bf16.mxu0 %v772_v1 }
  0x3f   :  { %672 = vmatpush1.bf16.msra.mxu0 %v671_v17 }
  0x40   :  { %673 = vmatprep.subr.bf16.mxu0 %v772_v1 }
  0x43   :  { %675 = vmatpush1.bf16.msra.mxu0 %v674_v20 }
  0x86   :  { %v114_v27 = vpop.permute.xlu0 %113  ;;  %v118_v1 = vpop.permute.xlu1 %117 }
  0x87   :  { %v126_v30 = vsel %vm125_vm0, %v84_v24, %v114_v27  ;;  %v128_v35 = vsel %vm125_vm0, %v86_v34, %v118_v1 }
  0x88   :  { %238 = vmatmul.mubr.f32.vlgmr.msra.gmra.mrb[0].mxu0 %v126_v30 }
  0x89   :  { %526 = vmatprep.mubr.msk.f32.mxu0 %vm125_vm0, %v852_v25  ;;  %v108_v25 = vsel %vm58_vm6, 0.0, %v864_v29  ;;  %v310_v29 = vld [vmem:[%s1099_s3 + $0xc0] sm:$0xff] }
  0x8a   :  { %v116_v33 = vpop.permute.xlu0 %115 }
  0x8b   :  { %v127_v23 = vsel %vm125_vm0, %v841_v22, %v116_v33  ;;  %v120_v36 = vpop.permute.xlu1 %119  ;;  %v292_v22 = vld [vmem:[%s1099_s3 + $0x30] sm:$0xff] }
  0x8c   :  { %243 = vmatmul.mubr.f32.gmra.mrb[2].mxu0 %v127_v23  ;;  %v129_v28 = vsel %vm125_vm0, %v869_v32, %v120_v36  ;;  %v692_v32 = vpack.c.bf16 %v311_v38, %v310_v29  ;;  %v320_v23 = vld [vmem:[%s1099_s3 + $0x110] sm:$0xff]  ;;  %v322_v29 = vld [vmem:[%s1099_s3 + $0x120] sm:$0xff]  ;;  %v323_v38 = vld [vmem:[%s1099_s3 + $0x128] sm:$0xff] }
  0x8d   :  { %527 = vmatprep.mubr.msk.f32.mxu0 %vm125_vm0, %v856_v26  ;;  %v293_v26 = vld [vmem:[%s1099_s3 + $0x38] sm:$0xff] }
  0x8e   :  { %v690_v37 = vpack.c.bf16 %v293_v26, %v292_v22 }
  0x90   :  { %248 = vmatmul.mubr.f32.gmra.mrb[4].mxu0 %v128_v35  ;;  %691 = vmatpush3.bf16.msra.mxu1 %v690_v37  ;;  %v321_v35 = vld [vmem:[%s1099_s3 + $0x118] sm:$0xff] }
  0x91   :  { %528 = vmatprep.mubr.msk.f32.mxu0 %vm125_vm0, %v108_v25  ;;  %693 = vmatprep.subr.bf16.mxu1 %v692_v32  ;;  %v712_v26 = vpack.c.bf16 %v321_v35, %v320_v23 }
  0x94   :  { %253 = vmatmul.mubr.f32.gmra.mrb[6].mxu0 %v129_v28  ;;  %695 = vmatpush3.bf16.msra.mxu1 %v694_v41  ;;  %v716_v41 = vpack.c.bf16 %v323_v38, %v322_v29 }
  0x95   :  { %697 = vmatprep.subr.bf16.mxu1 %v696_v44  ;;  %v326_v44 = vld [vmem:[%s1099_s3 + $0x140] sm:$0xff] }
  0x96   :  { %v724_v46 = vpack.c.bf16 %v327_v45, %v326_v44 }
  0x98   :  { %699 = vmatpush3.bf16.msra.mxu1 %v698_v47  ;;  %v329_v47 = vld [vmem:[%s1099_s3 + $0x158] sm:$0xff] }
  0x99   :  { %701 = vmatprep.subr.bf16.mxu1 %v700_v50  ;;  %v728_v48 = vpack.c.bf16 %v329_v47, %v328_v21  ;;  %v331_v50 = vld [vmem:[%s1099_s3 + $0x168] sm:$0xff] }
  0x9a   :  { %v732_v51 = vpack.c.bf16 %v331_v50, %v330_v49 }
  0x9c   :  { %703 = vmatpush3.bf16.msra.mxu1 %v702_v53  ;;  %v333_v53 = vld [vmem:[%s1099_s3 + $0x178] sm:$0xff] }
  0x9d   :  { %705 = vmatprep.subr.bf16.mxu1 %v704_v56  ;;  %v736_v54 = vpack.c.bf16 %v333_v53, %v332_v52 }
  0xa0   :  { %707 = vmatpush3.bf16.msra.mxu1 %v706_v59 }
  0xa1   :  { %709 = vmatprep.subr.bf16.mxu1 %v708_v62 }
 0x15b   :  { %v239_v0 = vpop.f32.mrb[0].mxu0 }
 0x15c   :  { %v240_v4 = vadd.f32 %v524_v63, %v239_v0  ;;  %v241_v5 = vpop.f32.mrb[1].mxu0 }
 0x15d   :  { %v529_v5 = vld [vmem:[%s1100_s4] ss:$0 sm:$0xff] }
 0x15e   :  { %v258_v6 = vmax.f32 %v240_v4, 0.0 }
 0x15f   :  { %v244_v7 = vpop.f32.mrb[2].mxu0 }
 0x160   :  { %v245_v8 = vadd.f32 %v524_v63, %v244_v7  ;;  %v246_v9 = vpop.f32.mrb[3].mxu0  ;;  %405 = vmatprep.mubr.f32.mxu1 %v258_v6  ;;  %v262_v11 = vrot.slane %v258_v6, 7  ;;  %v274_v13 = vrot.slane %v258_v6, 1 }
 0x162   :  { %v259_v10 = vmax.f32 %v245_v8, 0.0 }
 0x163   :  { %v249_v12 = vpop.f32.mrb[4].mxu0 }
 0x164   :  { %v263_v14 = vrot.slane %v259_v10, 7  ;;  %v275_v15 = vrot.slane %v259_v10, 1  ;;  %v250_v16 = vadd.f32 %v524_v63, %v249_v12  ;;  %v251_v17 = vpop.f32.mrb[5].mxu0 }
 0x166   :  { %v260_v18 = vmax.f32 %v250_v16, 0.0  ;;  %v268_v19 = vsel %vm71_vm2, %v262_v11, %v263_v14  ;;  %v280_v20 = vsel %vm92_vm1, %v274_v13, %v275_v15 }
 0x167   :  { %v254_v24 = vpop.f32.mrb[6].mxu0 }
 0x168   :  { %v264_v27 = vrot.slane %v260_v18, 7  ;;  %v276_v30 = vrot.slane %v260_v18, 1  ;;  %v255_v1 = vadd.f32 %v524_v63, %v254_v24  ;;  %v256_v33 = vpop.f32.mrb[7].mxu0 }
 0x16a   :  { %v261_v34 = vmax.f32 %v255_v1, 0.0  ;;  %v267_v36 = vsel %vm71_vm2, %v263_v14, %v264_v27  ;;  %v279_v25 = vsel %vm92_vm1, %v275_v15, %v276_v30 }
 0x16c   :  { %v265_v28 = vrot.slane %v261_v34, 7  ;;  %v277_v22 = vrot.slane %v261_v34, 1 }
 0x16e   :  { %v269_v37 = vsel %vm71_vm2, %v265_v28, %v262_v11  ;;  %v266_v32 = vsel %vm71_vm2, %v264_v27, %v265_v28  ;;  %v278_v39 = vsel %vm92_vm1, %v276_v30, %v277_v22  ;;  %v281_v40 = vsel %vm92_vm1, %v277_v22, %v274_v13 }
 0x16f   :  { %531 = vmatmul.mubr.msk.f32.vlgmr.msra.gmra.mrb[0].mxu1 %vm530_vm7, %v269_v37 }
 0x170   :  { %711 = vmatpush3.bf16.msra.mxu1 %v708_v62  ;;  %410 = vmatprep.mubr.f32.mxu1 %v259_v10 }
 0x171   :  { %713 = vmatprep.subr.bf16.mxu1 %v712_v26 }
 0x173   :  { %411 = vmatmul.mubr.f32.gmra.mrb[2].mxu1 %v268_v19 }
 0x174   :  { %715 = vmatpush3.bf16.msra.mxu1 %v712_v26  ;;  %415 = vmatprep.mubr.f32.mxu1 %v260_v18 }
 0x175   :  { %717 = vmatprep.subr.bf16.mxu1 %v716_v41 }
 0x177   :  { %533 = vmatmul.mubr.msk.f32.gmra.mrb[4].mxu1 %vm532_vm8, %v267_v36 }
 0x178   :  { %719 = vmatpush3.bf16.msra.mxu1 %v716_v41  ;;  %420 = vmatprep.mubr.f32.mxu1 %v261_v34 }
 0x179   :  { %721 = vmatprep.subr.bf16.mxu1 %v720_v2 }
 0x17b   :  { %421 = vmatmul.mubr.f32.gmra.mrb[6].mxu1 %v266_v32 }
 0x17c   :  { %723 = vmatpush3.bf16.msra.mxu1 %v720_v2  ;;  %634 = vmatprep.mubr.f32.mxu1 %v280_v20 }
 0x17d   :  { %725 = vmatprep.subr.bf16.mxu1 %v724_v46 }
 0x180   :  { %727 = vmatpush3.bf16.msra.mxu1 %v724_v46 }
 0x181   :  { %729 = vmatprep.subr.bf16.mxu1 %v728_v48 }
 0x184   :  { %731 = vmatpush3.bf16.msra.mxu1 %v728_v48 }
 0x185   :  { %733 = vmatprep.subr.bf16.mxu1 %v732_v51 }
 0x188   :  { %735 = vmatpush3.bf16.msra.mxu1 %v732_v51 }
 0x189   :  { %737 = vmatprep.subr.bf16.mxu1 %v736_v54 }
 0x18c   :  { %739 = vmatpush3.bf16.msra.mxu1 %v736_v54 }
 0x18f   :  { %635 = vmatmul.mubr.msk.f32.vlgmr.msra.gmra.mrb[8].mxu1 %vm534_vm9, %v279_v25 }
 0x190   :  { %637 = vmatprep.mubr.f32.mxu1 %v278_v39 }
 0x193   :  { %638 = vmatmul.mubr.msk.f32.gmra.mrb[10].mxu1 %vm536_vm10, %v281_v40 }
 0x242   :  { %v570_v55 = vpop.f32.mrb[0].mxu1 }
 0x243   :  { %v571_v56 = vpop.f32.mrb[1].mxu1 }
 0x244   :  { %v572_v57 = vadd.f32 %v571_v56, %v570_v55 }
 0x246   :  { %v573_v58 = vpop.f32.mrb[2].mxu1  ;;  %v408_v7 = vadd.f32 %v572_v57, %v529_v5 }
 0x247   :  { %v574_v59 = vpop.f32.mrb[3].mxu1 }
 0x248   :  { %v575_v60 = vadd.f32 %v574_v59, %v573_v58 }
 0x24a   :  { %v576_v61 = vpop.f32.mrb[4].mxu1  ;;  %v413_v6 = vadd.f32 %v575_v60, %v529_v5 }
 0x24b   :  { %v577_v62 = vpop.f32.mrb[5].mxu1 }
 0x24c   :  { %v578_v63 = vadd.f32 %v577_v62, %v576_v61 }
 0x24e   :  { %v579_v0 = vpop.f32.mrb[6].mxu1  ;;  %v418_v15 = vadd.f32 %v578_v63, %v529_v5 }
 0x24f   :  { %v580_v4 = vpop.f32.mrb[7].mxu1 }
 0x250   :  { %v581_v3 = vadd.f32 %v580_v4, %v579_v0 }
 0x252   :  { %v423_v12 = vadd.f32 %v581_v3, %v529_v5 }
 0x262   :  { %v636_v31 = vpop.f32.mrb[8].mxu1 }
 0x263   :  { %v498_v8 = vadd.f32 %v636_v31, %v413_v6  ;;  %v492_v9 = vpop.f32.mrb[9].mxu1 }
 0x264   :  { %v493_v10 = vadd.f32 %v492_v9, %v408_v7 }
 0x265   :  { %v512_v11 = vmax.f32 %v498_v8, 0.0 }
 0x266   :  { %v511_v13 = vmax.f32 %v493_v10, 0.0  ;;  %v639_v14 = vpop.f32.mrb[10].mxu1 }
 0x267   :  { %516 = vst [vmem:[%s1101_s5 + $0x8] sm:$0xff] %v512_v11  ;;  %v508_v16 = vadd.f32 %v639_v14, %v423_v12  ;;  %v502_v17 = vpop.f32.mrb[11].mxu1 }
 0x268   :  { %515 = vst [vmem:[%s1101_s5] sm:$0xff] %v511_v13  ;;  %v503_v18 = vadd.f32 %v502_v17, %v418_v15 }
 0x269   :  { %v514_v19 = vmax.f32 %v508_v16, 0.0 }
 0x26a   :  { %v513_v20 = vmax.f32 %v503_v18, 0.0 }
 0x26b   :  { %518 = vst [vmem:[%s1101_s5 + $0x18] sm:$0xff] %v514_v19 }
 0x26c   :  { %517 = vst [vmem:[%s1101_s5 + $0x10] sm:$0xff] %v513_v20 }
 0x26d   :  { %523 = vsyncpa [#allocation3], 1 }

</bundles_post_ra>
